<compile_context>
chip_gen: v7x
topology: tpu7x:2x2x1
jax: 0.10.0
libtpu: 0.0.40
codegen_flags: <defaults>
</compile_context>

<pallas_src>
import jax
import jax.numpy as jnp
from jax.experimental import pallas as pl
from jax.experimental.pallas import tpu as pltpu


SUBLANE = 16      # multiple of 16 covers bf16 x tiles and f32 out tiles
MAX_TB = 2048     # cap keeps double-buffered tiles + f32 hidden temp ~2-3 MiB


def _round_up(n, m):
    return ((n + m - 1) // m) * m


def _cdiv(a, b):
    return (a + b - 1) // b


def mlp_kernel(x_ref, w1_ref, b1_ref, w2_ref, b2_ref, o_ref):
    """One batch tile of: relu(x @ w1 + b1) @ w2 + b2.

    x/w1/w2 are bf16; MXU accumulation in f32 via preferred_element_type;
    bias add / ReLU stay f32; downcast only at the final store.
    """
    h = jnp.dot(x_ref[...], w1_ref[...], preferred_element_type=jnp.float32)
    h = jnp.maximum(h + b1_ref[...], 0.0)
    out = jnp.dot(h.astype(w2_ref.dtype), w2_ref[...],
                  preferred_element_type=jnp.float32)
    o_ref[...] = (out + b2_ref[...]).astype(o_ref.dtype)


def prepare_params(w1, b1, w2, b2):
    """Cast/reshape params once (hoist out of the per-call path)."""
    return (w1.astype(jnp.bfloat16),
            b1.astype(jnp.float32).reshape(1, -1),
            w2.astype(jnp.bfloat16),
            b2.astype(jnp.float32).reshape(1, -1))


def _select_tb(B, tb):
    """Pick a sublane-aligned batch tile; balance tiles across grid steps."""
    if tb is not None:
        # Robustness: round an explicit tb so BlockSpec lowering can't fail.
        return max(SUBLANE, _round_up(min(tb, MAX_TB), SUBLANE))
    if B <= 256:
        # Single tile: block dims == full array dims, zero batch padding.
        return B
    # >=2 balanced tiles (feeds both v7x TensorCores) with minimal last-tile
    # padding waste; never exceed MAX_TB.
    nb = max(2, _cdiv(B, MAX_TB))
    return _round_up(_cdiv(B, nb), SUBLANE)


def _forward_prepared(x, w1_bf, b1_f32, w2_bf, b2_f32, *, tb=None):
    B, D_in = x.shape
    H = w1_bf.shape[1]
    D_out = w2_bf.shape[1]
    out_dtype = x.dtype

    tb = _select_tb(B, tb)
    nb = _cdiv(B, tb)
    b_p = nb * tb

    # bf16 activations (halves DMA bytes, native MXU rate); batch padded only
    # if the grid needs it (single-tile case runs completely unpadded).
    xp = x.astype(jnp.bfloat16)
    if b_p > B:
        xp = jnp.pad(xp, ((0, b_p - B), (0, 0)))

    flops = 2 * b_p * D_in * H + 2 * b_p * H * D_out
    bytes_accessed = (xp.size * 2 + w1_bf.size * 2 + w2_bf.size * 2
                      + b1_f32.size * 4 + b2_f32.size * 4
                      + b_p * D_out * jnp.dtype(out_dtype).itemsize)

    # Grid-invariant (VMEM-resident) weight/bias blocks.
    invariant = lambda shape: pl.BlockSpec(shape, lambda i: (0, 0))

    out = pl.pallas_call(
        mlp_kernel,
        out_shape=jax.ShapeDtypeStruct((b_p, D_out), out_dtype),
        grid=(nb,),
        in_specs=[
            pl.BlockSpec((tb, D_in), lambda i: (i, 0)),   # x: batch-tiled, unpadded lanes
            invariant((D_in, H)),                         # w1
            invariant((1, H)),                            # b1
            invariant((H, D_out)),                        # w2
            invariant((1, D_out)),                        # b2
        ],
        out_specs=pl.BlockSpec((tb, D_out), lambda i: (i, 0)),  # narrow (masked vst)
        compiler_params=pltpu.CompilerParams(
            dimension_semantics=("parallel",)),
        cost_estimate=pl.CostEstimate(
            flops=flops, transcendentals=0, bytes_accessed=bytes_accessed),
    )(xp, w1_bf, b1_f32, w2_bf, b2_f32)

    # Only the batch padding (if any) needs stripping; no lane slice anymore.
    return out[:B] if b_p > B else out


def make_my_sequential(w1, b1, w2, b2):
    """Factory: prepare params once, return a jitted forward(x)."""
    params = prepare_params(w1, b1, w2, b2)

    @jax.jit
    def forward(x):
        return _forward_prepared(x, *params)

    return forward


def my_sequential_forward(x, w1, b1, w2, b2, *, tb=None):
    """One-shot convenience wrapper (params prepared per call)."""
    return _forward_prepared(x, *prepare_params(w1, b1, w2, b2), tb=tb)


def reference_forward_f32(x, w1, b1, w2, b2):
    h = jnp.maximum(x @ w1 + b1, 0.0)
    return h @ w2 + b2


def reference_forward_bf16(x, w1, b1, w2, b2):
    # Mirrors the kernel's numerics: bf16 operands, f32 accumulation/elementwise.
    f = lambda a: a.astype(jnp.bfloat16).astype(jnp.float32)
    h = jnp.maximum(f(x) @ f(w1) + b1, 0.0)
    return f(h) @ f(w2) + b2


if __name__ == "__main__":
    key = jax.random.PRNGKey(0)
    k_x, k_w1, k_b1, k_w2, k_b2 = jax.random.split(key, 5)

    B, D_in, H, D_out = 2, 20, 256, 10

    x = jax.random.normal(k_x, (B, D_in), dtype=jnp.float32)
    # nn.Linear-style uniform(-1/sqrt(fan_in), 1/sqrt(fan_in)) init.
    w1 = jax.random.uniform(k_w1, (D_in, H), jnp.float32,
                            -1.0 / jnp.sqrt(D_in), 1.0 / jnp.sqrt(D_in))
    b1 = jax.random.uniform(k_b1, (H,), jnp.float32,
                            -1.0 / jnp.sqrt(D_in), 1.0 / jnp.sqrt(D_in))
    w2 = jax.random.uniform(k_w2, (H, D_out), jnp.float32,
                            -1.0 / jnp.sqrt(H), 1.0 / jnp.sqrt(H))
    b2 = jax.random.uniform(k_b2, (D_out,), jnp.float32,
                            -1.0 / jnp.sqrt(H), 1.0 / jnp.sqrt(H))

    forward = make_my_sequential(w1, b1, w2, b2)

    # Small-batch path (single unpadded tile).
    out = jax.block_until_ready(forward(x))
    assert out.shape == (B, D_out)
    ref_bf16 = reference_forward_bf16(x, w1, b1, w2, b2)
    assert jnp.allclose(out, ref_bf16, atol=2e-3, rtol=2e-3), \
        "mismatch vs bf16-equivalent reference (small batch)"
    ref_f32 = reference_forward_f32(x, w1, b1, w2, b2)
    assert jnp.allclose(out, ref_f32, atol=5e-2, rtol=5e-2), \
        "mismatch vs f32 reference (small batch)"

    # Multi-tile path (2 balanced tiles + last-tile batch padding).
    B2 = 300
    x2 = jax.random.normal(jax.random.PRNGKey(1), (B2, D_in), dtype=jnp.float32)
    out2 = jax.block_until_ready(forward(x2))
    assert out2.shape == (B2, D_out)
    ref2 = reference_forward_bf16(x2, w1, b1, w2, b2)
    assert jnp.allclose(out2, ref2, atol=2e-3, rtol=2e-3), \
        "mismatch vs bf16-equivalent reference (multi-tile batch)"

    print("KERNEL_OK")
</pallas_src>

<mosaic_0001>
module attributes {stable_mosaic.version = 11 : i64} {
  func.func @mlp_kernel(%arg0: i32, %arg1: memref<2x20xbf16, #tpu.memory_space<vmem>>, %arg2: memref<20x256xbf16, #tpu.memory_space<vmem>>, %arg3: memref<1x256xf32, #tpu.memory_space<vmem>>, %arg4: memref<256x10xbf16, #tpu.memory_space<vmem>>, %arg5: memref<1x10xf32, #tpu.memory_space<vmem>>, %arg6: memref<2x10xf32, #tpu.memory_space<vmem>>) attributes {dimension_semantics = [#tpu.dimension_semantics<parallel>], iteration_bounds = array<i64: 1>, scalar_prefetch = 0 : i64, scratch_operands = 0 : i64, tpu.core_type = #tpu.core_type<tc>, window_params = [{transform_indices = @transform_0, window_bounds = array<i64: 2, 20>}, {pipeline_mode = #tpu.pipeline_mode<synchronous>, transform_indices = @transform_1, window_bounds = array<i64: 20, 256>}, {pipeline_mode = #tpu.pipeline_mode<synchronous>, transform_indices = @transform_2, window_bounds = array<i64: 1, 256>}, {pipeline_mode = #tpu.pipeline_mode<synchronous>, transform_indices = @transform_3, window_bounds = array<i64: 256, 10>}, {pipeline_mode = #tpu.pipeline_mode<synchronous>, transform_indices = @transform_4, window_bounds = array<i64: 1, 10>}, {transform_indices = @transform_5, window_bounds = array<i64: 2, 10>}]} {
    %c0 = arith.constant 0 : index
    %c0_0 = arith.constant 0 : index
    %0 = vector.load %arg1[%c0, %c0_0] : memref<2x20xbf16, #tpu.memory_space<vmem>>, vector<2x20xbf16>
    %c0_1 = arith.constant 0 : index
    %c0_2 = arith.constant 0 : index
    %1 = vector.load %arg2[%c0_1, %c0_2] : memref<20x256xbf16, #tpu.memory_space<vmem>>, vector<20x256xbf16>
    %cst = arith.constant dense<0.000000e+00> : vector<2x256xf32>
    %2 = tpu.matmul %0, %1, %cst {dimension_numbers = #tpu.dot_dimension_numbers<[1], [0], [0], [1], [0, 0, 1, 1], [], []>} : vector<2x20xbf16>, vector<20x256xbf16>, vector<2x256xf32> -> vector<2x256xf32>
    %c0_3 = arith.constant 0 : index
    %c0_4 = arith.constant 0 : index
    %3 = vector.load %arg3[%c0_3, %c0_4] : memref<1x256xf32, #tpu.memory_space<vmem>>, vector<1x256xf32>
    %4 = vector.broadcast %3 : vector<1x256xf32> to vector<2x256xf32>
    %5 = arith.addf %2, %4 : vector<2x256xf32>
    %cst_5 = arith.constant 0.000000e+00 : f32
    %6 = vector.broadcast %cst_5 : f32 to vector<2x256xf32>
    %7 = arith.maximumf %5, %6 : vector<2x256xf32>
    %8 = arith.truncf %7 : vector<2x256xf32> to vector<2x256xbf16>
    %c0_6 = arith.constant 0 : index
    %c0_7 = arith.constant 0 : index
    %9 = vector.load %arg4[%c0_6, %c0_7] : memref<256x10xbf16, #tpu.memory_space<vmem>>, vector<256x10xbf16>
    %cst_8 = arith.constant dense<0.000000e+00> : vector<2x10xf32>
    %10 = tpu.matmul %8, %9, %cst_8 {dimension_numbers = #tpu.dot_dimension_numbers<[1], [0], [0], [1], [0, 0, 1, 1], [], []>} : vector<2x256xbf16>, vector<256x10xbf16>, vector<2x10xf32> -> vector<2x10xf32>
    %c0_9 = arith.constant 0 : index
    %c0_10 = arith.constant 0 : index
    %11 = vector.load %arg5[%c0_9, %c0_10] : memref<1x10xf32, #tpu.memory_space<vmem>>, vector<1x10xf32>
    %12 = vector.broadcast %11 : vector<1x10xf32> to vector<2x10xf32>
    %13 = arith.addf %10, %12 : vector<2x10xf32>
    %c0_11 = arith.constant 0 : index
    %c0_12 = arith.constant 0 : index
    %14 = vector.load %arg6[%c0_11, %c0_12] : memref<2x10xf32, #tpu.memory_space<vmem>>, vector<2x10xf32>
    tpu.vector_store %arg6[%c0_11, %c0_12], %13 {strides = array<i32>} : memref<2x10xf32, #tpu.memory_space<vmem>>, vector<2x10xf32>,
    return
  }
  func.func @transform_0(%arg0: i32) -> (i32, i32) {
    %c0_i32 = arith.constant 0 : i32
    %c0_i32_0 = arith.constant 0 : i32
    return %arg0, %c0_i32 : i32, i32
  }
  func.func @transform_1(%arg0: i32) -> (i32, i32) {
    %c0_i32 = arith.constant 0 : i32
    %c0_i32_0 = arith.constant 0 : i32
    %c0_i32_1 = arith.constant 0 : i32
    return %c0_i32, %c0_i32_0 : i32, i32
  }
  func.func @transform_2(%arg0: i32) -> (i32, i32) {
    %c0_i32 = arith.constant 0 : i32
    %c0_i32_0 = arith.constant 0 : i32
    %c0_i32_1 = arith.constant 0 : i32
    return %c0_i32, %c0_i32_0 : i32, i32
  }
  func.func @transform_3(%arg0: i32) -> (i32, i32) {
    %c0_i32 = arith.constant 0 : i32
    %c0_i32_0 = arith.constant 0 : i32
    %c0_i32_1 = arith.constant 0 : i32
    return %c0_i32, %c0_i32_0 : i32, i32
  }
  func.func @transform_4(%arg0: i32) -> (i32, i32) {
    %c0_i32 = arith.constant 0 : i32
    %c0_i32_0 = arith.constant 0 : i32
    %c0_i32_1 = arith.constant 0 : i32
    return %c0_i32, %c0_i32_0 : i32, i32
  }
  func.func @transform_5(%arg0: i32) -> (i32, i32) {
    %c0_i32 = arith.constant 0 : i32
    %c0_i32_0 = arith.constant 0 : i32
    return %arg0, %c0_i32 : i32, i32
  }
}

</mosaic_0001>

<bundles_post_ra>
// kernel: forward.1
= control target key start
LH: loop header
LB: loop body
LE: loop exit
PB: predicated region body
PF: predicated region fallthrough
CT: control target
= control target key end

     0   :  { %10 = vsyncpa [#allocation3], 0  ;;  %s559_s0 = inlined_call_operand.vmem [shape: bf16[2,20], index: 0, kind: input, shape index: {}]   ;;  %s560_s1 = inlined_call_operand.hbm [shape: bf16[20,256], index: 1, kind: input, shape index: {}]   ;;  %s561_s2 = inlined_call_operand.vmem [shape: f32[1,256], index: 2, kind: input, shape index: {}]   ;;  %s562_s3 = inlined_call_operand.hbm [shape: bf16[256,10], index: 3, kind: input, shape index: {}]   ;;  %s563_s4 = inlined_call_operand.vmem [shape: f32[1,10], index: 4, kind: input, shape index: {}]   ;;  %s564_s5 = inlined_call_operand.hbm [shape: f32[2,10], index: 5, kind: output, shape index: {}]  }
   0x1   :  { %11 = vsyncpa [#allocation6], 0 }
   0x2   :  { %12 = vsyncpa [#allocation4], 0  ;;  %s476_s18 = smov [#allocation2]   ;;  %s404_s22 = scalar_lea.hbm %s560_s1, 384 }
   0x3   :  { %s20_s19 = sshll.u32 %s476_s18, 4  ;;  %p405_p0 = scmp.ne.s32.totalorder %s560_s1, %s404_s22  ;;  %s21_s19 = int_to_ptr.vmem [resolvable:$true] %s20_s19 }
   0x4   :  { %p408_p1 = scmp.lt.u32.totalorder %s404_s22, %s560_s1 }
   0x6   :  { %p410_p2 = pnand %p408_p1, %p405_p0 }
   0x8   :  { %413 = shalt.err (!%p410_p2)
}
   0x9   :  { %s414_s27 = scalar_lea.vmem %s21_s19, 384  ;;  %p419_p4 = scmp.lt.s32.totalorder %s21_s19, %s21_s19 }
   0xa   :  { %p415_p3 = scmp.ne.s32.totalorder %s21_s19, %s414_s27  ;;  %p420_p5 = scmp.lt.s32.totalorder %s414_s27, %s414_s27 }
   0xc   :  { %p421_p6 = por %p420_p5, %p419_p4 }
   0xe   :  { %p422_p7 = pnand %p421_p6, %p415_p3 }
  0x10   :  { %425 = shalt.err (!%p422_p7)
}
  0x11   :  { %s477_s28 = smov 128   ;;  %s478_s29 = smov 8  }
  0x12   :  { %26 = dma.hbm_to_vmem [thread:$0]  %s560_s1, 384, %s21_s19, [#allocation3], %s477_s28, %s477_s28, %s478_s29  }
  0x13   :  { %s479_s7 = smov [#allocation5]   ;;  %s426_s11 = scalar_lea.hbm %s562_s3, 2048 }
  0x14   :  { %s34_s8 = sshll.u32 %s479_s7, 4  ;;  %p427_p8 = scmp.ne.s32.totalorder %s562_s3, %s426_s11  ;;  %s35_s8 = int_to_ptr.vmem [resolvable:$true] %s34_s8 }
  0x15   :  { %p430_p9 = scmp.lt.u32.totalorder %s426_s11, %s562_s3 }
  0x17   :  { %p432_p10 = pnand %p430_p9, %p427_p8 }
  0x19   :  { %435 = shalt.err (!%p432_p10)
}
  0x1a   :  { %s436_s16 = scalar_lea.vmem %s35_s8, 2048  ;;  %p441_p12 = scmp.lt.s32.totalorder %s35_s8, %s35_s8 }
  0x1b   :  { %p437_p11 = scmp.ne.s32.totalorder %s35_s8, %s436_s16  ;;  %p442_p13 = scmp.lt.s32.totalorder %s436_s16, %s436_s16 }
  0x1d   :  { %p443_p0 = por %p442_p13, %p441_p12 }
  0x1f   :  { %p444_p1 = pnand %p443_p0, %p437_p11 }
  0x21   :  { %447 = shalt.err (!%p444_p1)
}
  0x22   :  { %s480_s1 = smov 64   ;;  %s481_s17 = smov 4  }
  0x23   :  { %40 = dma.hbm_to_vmem [thread:$0]  %s562_s3, 2048, %s35_s8, [#allocation6], %s480_s1, %s480_s1, %s481_s17  }
  0x24   :  { %470 = dma.done.wait [#allocation3], 384  }
  0x25   :  { %471 = vsyncadd [#allocation3], 4294966912 }
  0x26   :  { %472 = dma.done.wait [#allocation6], 2048  }
  0x27   :  { %473 = vsyncadd [#allocation6], 4294965248  ;;  %v482_v0 = vmov 0   ;;  %v383_v1 = vld [vmem:[#allocation2 + $0x4] ss:$8 sps:$4 sm:$0xff]   ;;  %vm85_vm0 = vcmask 1041408   ;;  %v56_v24 = vlaneseq }
  0x28   :  { %124 = vmatprep.mubr.bf16.mxu0 %v482_v0  ;;  %v385_v2 = vld [vmem:[#allocation2] ss:$8 sps:$4 sm:$0xff]   ;;  %v53_v3 = vld [vmem:[#allocation2 + $0x10] sm:$0x33]  ;;  %92 = vmatprep.subr.bf16.mxu0 %v383_v1  ;;  %v388_v6 = vld [vmem:[#allocation5 + $0x40] sm:$0xff]   ;;  %vm81_vm1 = vcmask 162816  }
  0x29   :  { %v333_v4 = vcombine.high %v53_v3, %v53_v3  ;;  %v332_v5 = vcombine.low %v53_v3, %v53_v3  ;;  %93 = vmatpush1.bf16.msra.mxu0 %v385_v2  ;;  %v389_v7 = vld [vmem:[#allocation5] sm:$0xff]   ;;  %353 = vmatprep.subr.bf16.mxu1 %v388_v6  ;;  %v390_v9 = vld [vmem:[#allocation5 + $0x48] sm:$0xff]   ;;  %v392_v11 = vld [vmem:[#allocation5 + $0x50] sm:$0xff]   ;;  %v57_v25 = vshrl.u32 %v56_v24, 7  ;;  %vm312_vm2 = vcmask 74752  }
  0x2a   :  { %354 = vmatpush3.bf16.msra.mxu1 %v389_v7  ;;  %v391_v10 = vld [vmem:[#allocation5 + $0x8] sm:$0xff]   ;;  %v393_v13 = vld [vmem:[#allocation5 + $0x10] sm:$0xff]   ;;  %v394_v14 = vld [vmem:[#allocation5 + $0x58] sm:$0xff]  }
  0x2b   :  { %334 = vmatprep.subr.msk.bf16.mxu0 %vm85_vm0, %v333_v4  ;;  %v87_v8 = vsel %vm85_vm0, %v332_v5, 0  ;;  %355 = vmatprep.subr.bf16.mxu1 %v390_v9  ;;  %v50_v12 = vld [vmem:[%s559_s0] sm:$0x1]  ;;  %v395_v15 = vld [vmem:[#allocation5 + $0x18] sm:$0xff]   ;;  %v396_v16 = vld [vmem:[#allocation5 + $0x60] sm:$0xff]   ;;  %v58_v26 = vsub.s32 0, %v57_v25 }
  0x2c   :  { %v397_v17 = vld [vmem:[#allocation5 + $0x20] sm:$0xff]   ;;  %v398_v18 = vld [vmem:[#allocation5 + $0x68] sm:$0xff]   ;;  %v400_v20 = vld [vmem:[#allocation5 + $0x70] sm:$0xff]   ;;  %v62_v28 = vsub.s32 1, %v57_v25 }
  0x2d   :  { %95 = vmatpush1.bf16.msra.mxu0 %v87_v8  ;;  %v399_v19 = vld [vmem:[#allocation5 + $0x28] sm:$0xff]   ;;  %v401_v21 = vld [vmem:[#allocation5 + $0x30] sm:$0xff]   ;;  %v402_v22 = vld [vmem:[#allocation5 + $0x78] sm:$0xff]  }
  0x2e   :  { %356 = vmatpush3.bf16.msra.mxu1 %v391_v10  ;;  %v403_v23 = vld [vmem:[#allocation5 + $0x38] sm:$0xff]   ;;  %v54_v27 = vld [vmem:[%s561_s2] sm:$0x3]  ;;  %s483_s2 = smov [#allocation7]  }
  0x2f   :  { %357 = vmatprep.subr.bf16.mxu1 %v392_v11  ;;  %v59_v29 = vrot.slane %v54_v27, %v58_v26  ;;  %v63_v30 = vrot.slane %v54_v27, %v62_v28  ;;  %v336_v42 = vld [vmem:[%s563_s4] ss:$0 sm:$0xff]  ;;  %s320_s24 = sshll.u32 %s483_s2, 4  ;;  %s321_s24 = int_to_ptr.vmem [resolvable:$true] %s320_s24 }
  0x30   :  { %335 = vmatmul.mubr.msk.bf16.vlgmr.msra.gmra.mrb[0].mxu0 %vm81_vm1, %v50_v12  ;;  %s448_s25 = scalar_lea.vmem %s321_s24, 32  ;;  %p453_p3 = scmp.lt.s32.totalorder %s321_s24, %s321_s24 }
  0x31   :  { %p449_p2 = scmp.ne.s32.totalorder %s321_s24, %s448_s25  ;;  %p454_p4 = scmp.lt.s32.totalorder %s448_s25, %s448_s25 }
  0x32   :  { %358 = vmatpush3.bf16.msra.mxu1 %v393_v13 }
  0x33   :  { %359 = vmatprep.subr.bf16.mxu1 %v394_v14  ;;  %p455_p5 = por %p454_p4, %p453_p3 }
  0x35   :  { %p456_p6 = pnand %p455_p5, %p449_p2 }
  0x36   :  { %360 = vmatpush3.bf16.msra.mxu1 %v395_v15 }
  0x37   :  { %361 = vmatprep.subr.bf16.mxu1 %v396_v16 }
  0x3a   :  { %362 = vmatpush3.bf16.msra.mxu1 %v397_v17 }
  0x3b   :  { %363 = vmatprep.subr.bf16.mxu1 %v398_v18 }
  0x3e   :  { %364 = vmatpush3.bf16.msra.mxu1 %v399_v19 }
  0x3f   :  { %365 = vmatprep.subr.bf16.mxu1 %v400_v20 }
  0x42   :  { %366 = vmatpush3.bf16.msra.mxu1 %v401_v21 }
  0x43   :  { %367 = vmatprep.subr.bf16.mxu1 %v402_v22 }
  0x46   :  { %368 = vmatpush3.bf16.msra.mxu1 %v403_v23 }
 0x103   :  { %v126_v31 = vpop.f32.mrb[0].mxu0 }
 0x104   :  { %v127_v32 = vadd.f32 %v126_v31, %v59_v29  ;;  %v128_v33 = vpop.f32.mrb[1].mxu0 }
 0x105   :  { %v129_v34 = vadd.f32 %v128_v33, %v63_v30  ;;  %v130_v35 = vpop.f32.mrb[2].mxu0 }
 0x106   :  { %v133_v36 = vmax.f32 %v127_v32, 0.0  ;;  %v131_v37 = vpop.f32.mrb[3].mxu0 }
 0x107   :  { %v134_v38 = vmax.f32 %v129_v34, 0.0 }
 0x108   :  { %v135_v40 = vpack.c.bf16 %v133_v36, %v133_v36 }
 0x109   :  { %v136_v39 = vpack.c.bf16 %v134_v38, %v134_v38 }
 0x10b   :  { %304 = vmatprep.mubr.bf16.mxu1 %v136_v39 }
 0x10c   :  { %305 = vmatmul.mubr.bf16.vlgmr.msra.gmra.mrb[0].mxu1 %v135_v40 }
 0x1df   :  { %v369_v41 = vpop.f32.mrb[0].mxu1 }
 0x1e0   :  { %v370_v43 = vpop.f32.mrb[1].mxu1 }
 0x1e1   :  { %v371_v44 = vadd.f32 %v370_v43, %v369_v41  ;;  %v372_v45 = vpop.f32.mrb[2].mxu1 }
 0x1e2   :  { %v373_v46 = vpop.f32.mrb[3].mxu1 }
 0x1e3   :  { %v307_v47 = vadd.f32 %v371_v44, %v336_v42 }
 0x1e5   :  { %313 = vst.msk [vmem:[#allocation7] sm:$0x3] %vm312_vm2, %v307_v47 }
 0x1e6   :  { %459 = shalt.err (!%p456_p6)
}
 0x1e7   :  { %s460_s4 = scalar_lea.hbm %s564_s5, 32 }
 0x1e8   :  { %p461_p7 = scmp.ne.s32.totalorder %s564_s5, %s460_s4  ;;  %p464_p8 = scmp.lt.u32.totalorder %s460_s4, %s564_s5 }
 0x1ea   :  { %p466_p9 = pnand %p464_p8, %p461_p7 }
 0x1ec   :  { %469 = shalt.err (!%p466_p9)
}
 0x1ed   :  { %323 = dma.vmem_to_hbm [thread:$0]  %s321_s24, 32, %s564_s5, [#allocation4]  }
 0x1ee   :  { %474 = dma.done.wait [#allocation4], 32  }
 0x1ef   :  { %475 = vsyncadd [#allocation4], 4294967264 }
 0x1f0   :  { %327 = vsyncpa [#allocation3], 1 }
 0x1f1   :  { %328 = vsyncpa [#allocation6], 1 }
 0x1f2   :  { %329 = vsyncpa [#allocation4], 1 }

</bundles_post_ra>
